<compile_context>
chip_gen: v7x
topology: tpu7x:2x2x1
jax: 0.10.0
libtpu: 0.0.40
codegen_flags: <defaults>
</compile_context>

<pallas_src>
import jax
import jax.numpy as jnp
from jax.experimental import pallas as pl
from jax.experimental.pallas import tpu as pltpu

MIN_NORM = 1e-15
EPS_F32 = 4e-3  # projection epsilon used for float32 in the reference implementation


def _round_up(n, m):
    return ((n + m - 1) // m) * m


def _cdiv(a, b):
    return -(-a // b)


def _choose_tile_b(batch, d, sublane, target_block_bytes=2 << 20):
    """Batch tile: ~2 MiB blocks, multiple of `sublane`, even block count when possible."""
    b_up = _round_up(batch, sublane)
    d_vmem = _round_up(d, 128)  # VMEM rows are lane-padded to 128 regardless of D
    rows = (target_block_bytes // (d_vmem * 4)) // sublane * sublane
    rows = max(sublane, min(rows, b_up))
    # v7x shards the "parallel" grid axis across 2 TensorCores: prefer an even block
    # count (>= 2) whenever the batch allows it.  No effect on v5e/v6e (1 TC).
    if b_up >= 2 * sublane:
        n = _cdiv(batch, rows)
        if n < 2:
            n = 2
        elif n % 2 == 1:
            n += 1
        rows = max(sublane, _round_up(_cdiv(batch, n), sublane))
    return rows


def _mobius_add_kernel(s_ref, x_ref, y_ref, o_ref):
    # s_ref: SMEM (2,) f32 = [c, c*||y||^2]   (grid-invariant scalars, hoisted to wrapper)
    # x_ref: (TB, D) batch tile
    # y_ref: (1, D)  projected bias (expmap0 + proj already applied in the wrapper)
    c = s_ref[0]
    c_y2 = s_ref[1]
    x = x_ref[...].astype(jnp.float32)
    y = y_ref[...].astype(jnp.float32)

    x2 = jnp.sum(x * x, axis=-1, keepdims=True)   # (TB, 1)
    xy = jnp.sum(x * y, axis=-1, keepdims=True)   # (TB, 1)

    two_c_xy = 2.0 * c * xy
    c_x2 = c * x2
    num = (1.0 + two_c_xy + c_y2) * x + (1.0 - c_x2) * y
    denom = 1.0 + two_c_xy + c_x2 * c_y2          # == 1 + 2c<x,y> + c^2 ||x||^2 ||y||^2
    inv = 1.0 / jnp.maximum(denom, MIN_NORM)      # exact reciprocal on the (TB,1) column only
    o_ref[...] = (num * inv).astype(o_ref.dtype)


def mobius_add(x, bias, curvature, *, tile_b=None):
    """x: (B, D) points on the Poincare ball; bias: (D,) Euclidean parameter."""
    B, D = x.shape

    # --- grid-invariant bias math, hoisted out of the kernel (pure JAX / XLA) ---
    c = jnp.asarray(curvature, jnp.float32)          # works for python float or traced array
    sqrt_c = jnp.sqrt(c)
    b32 = bias.astype(jnp.float32)
    u_norm = jnp.maximum(jnp.sqrt(jnp.sum(b32 * b32)), MIN_NORM)
    gamma = jnp.tanh(sqrt_c * u_norm) * b32 / (sqrt_c * u_norm)             # expmap0 (proj_tan0 = id)
    g_norm = jnp.maximum(jnp.sqrt(jnp.sum(gamma * gamma)), MIN_NORM)
    maxnorm = (1.0 - EPS_F32) / sqrt_c
    p_bias = jnp.where(g_norm > maxnorm, gamma / g_norm * maxnorm, gamma)   # proj
    c_y2 = c * jnp.sum(p_bias * p_bias)
    scalars = jnp.stack([c, c_y2]).astype(jnp.float32)                      # -> SMEM
    y_row = p_bias.reshape(1, D)

    # --- tiling: x streams straight from HBM, no wrapper pad/slice copies ---
    sublane = 8 if jnp.dtype(x.dtype).itemsize >= 4 else 16
    if tile_b is None:
        tile_b = _choose_tile_b(B, D, sublane)
    grid = _cdiv(B, tile_b)

    out = pl.pallas_call(
        _mobius_add_kernel,
        out_shape=jax.ShapeDtypeStruct((B, D), x.dtype),
        grid_spec=pltpu.PrefetchScalarGridSpec(
            num_scalar_prefetch=0,
            grid=(grid,),
            in_specs=[
                pl.BlockSpec(memory_space=pltpu.MemorySpace.SMEM),  # [c, c*||y||^2]
                pl.BlockSpec((tile_b, D), lambda i: (i, 0)),        # x tile (last dim = full D)
                pl.BlockSpec((1, D), lambda i: (0, 0)),             # resident projected bias
            ],
            out_specs=pl.BlockSpec((tile_b, D), lambda i: (i, 0)),
        ),
        compiler_params=pltpu.CompilerParams(
            dimension_semantics=("parallel",),
            vmem_limit_bytes=32 * 1024 * 1024,
        ),
    )(scalars, x, y_row)
    return out


def _reference(x, b, c):
    """Pure-JAX reference (same math, no Pallas)."""
    c = jnp.asarray(c, jnp.float32)
    sqrt_c = jnp.sqrt(c)
    b32 = b.astype(jnp.float32)
    un = jnp.maximum(jnp.linalg.norm(b32), MIN_NORM)
    gamma = jnp.tanh(sqrt_c * un) * b32 / (sqrt_c * un)
    gn = jnp.maximum(jnp.linalg.norm(gamma), MIN_NORM)
    maxn = (1.0 - EPS_F32) / sqrt_c
    y = jnp.where(gn > maxn, gamma / gn * maxn, gamma)[None, :]
    xf = x.astype(jnp.float32)
    x2 = jnp.sum(xf * xf, -1, keepdims=True)
    y2 = jnp.sum(y * y, -1, keepdims=True)
    xy = jnp.sum(xf * y, -1, keepdims=True)
    num = (1 + 2 * c * xy + c * y2) * xf + (1 - c * x2) * y
    den = 1 + 2 * c * xy + c * c * x2 * y2
    return (num / jnp.maximum(den, MIN_NORM)).astype(x.dtype)


if __name__ == "__main__":
    key = jax.random.PRNGKey(0)
    k1, k2, k3, k4, k5 = jax.random.split(key, 5)

    # Case 1: module defaults — bias initialized to 0 (reset_parameters), B=8, D=32.
    B, D = 8, 32
    x = 0.3 * jax.random.normal(k1, (B, D), dtype=jnp.float32)
    bias = jnp.zeros((D,), dtype=jnp.float32)
    out = mobius_add(x, bias, 1.0)
    jax.block_until_ready(out)
    assert out.shape == (B, D)
    assert jnp.allclose(out, _reference(x, bias, 1.0), atol=1e-5, rtol=1e-5)

    # Case 2: non-zero bias, non-128 feature dim, 2-block grid with a partial edge block.
    B2, D2 = 24, 48
    x2 = 0.3 * jax.random.normal(k2, (B2, D2), dtype=jnp.float32)
    bias2 = 0.1 * jax.random.normal(k3, (D2,), dtype=jnp.float32)
    out2 = mobius_add(x2, bias2, 1.0)
    jax.block_until_ready(out2)
    assert out2.shape == (B2, D2)
    assert jnp.allclose(out2, _reference(x2, bias2, 1.0), atol=1e-5, rtol=1e-5)

    # Case 3: lane-dense D=128, batch not a multiple of 8, non-unit curvature passed as array.
    B3, D3 = 20, 128
    x3 = 0.3 * jax.random.normal(k4, (B3, D3), dtype=jnp.float32)
    bias3 = 0.1 * jax.random.normal(k5, (D3,), dtype=jnp.float32)
    c3 = jnp.float32(0.7)
    out3 = mobius_add(x3, bias3, c3)
    jax.block_until_ready(out3)
    assert out3.shape == (B3, D3)
    assert jnp.allclose(out3, _reference(x3, bias3, c3), atol=1e-5, rtol=1e-5)

    print("KERNEL_OK")
</pallas_src>

<mosaic_0001>
module attributes {stable_mosaic.version = 11 : i64} {
  func.func @_mobius_add_kernel(%arg0: i32, %arg1: memref<2xf32, #tpu.memory_space<smem>>, %arg2: memref<8x32xf32, #tpu.memory_space<vmem>>, %arg3: memref<1x32xf32, #tpu.memory_space<vmem>>, %arg4: memref<8x32xf32, #tpu.memory_space<vmem>>) attributes {dimension_semantics = [#tpu.dimension_semantics<parallel>], iteration_bounds = array<i64: 1>, scalar_prefetch = 0 : i64, scratch_operands = 0 : i64, tpu.core_type = #tpu.core_type<tc>, window_params = [{transform_indices = @transform_0, window_bounds = array<i64: 2>}, {transform_indices = @transform_1, window_bounds = array<i64: 8, 32>}, {pipeline_mode = #tpu.pipeline_mode<synchronous>, transform_indices = @transform_2, window_bounds = array<i64: 1, 32>}, {transform_indices = @transform_3, window_bounds = array<i64: 8, 32>}]} {
    %c0 = arith.constant 0 : index
    %0 = memref.load %arg1[%c0] : memref<2xf32, #tpu.memory_space<smem>>
    %c1 = arith.constant 1 : index
    %1 = memref.load %arg1[%c1] : memref<2xf32, #tpu.memory_space<smem>>
    %c0_0 = arith.constant 0 : index
    %c0_1 = arith.constant 0 : index
    %2 = vector.load %arg2[%c0_0, %c0_1] : memref<8x32xf32, #tpu.memory_space<vmem>>, vector<8x32xf32>
    %c0_2 = arith.constant 0 : index
    %c0_3 = arith.constant 0 : index
    %3 = vector.load %arg3[%c0_2, %c0_3] : memref<1x32xf32, #tpu.memory_space<vmem>>, vector<1x32xf32>
    %4 = arith.mulf %2, %2 : vector<8x32xf32>
    %cst = arith.constant dense<0.000000e+00> : vector<8xf32>
    %5 = vector.multi_reduction <add>, %4, %cst [1] : vector<8x32xf32> to vector<8xf32>
    %6 = vector.shape_cast %5 : vector<8xf32> to vector<8x1xf32>
    %7 = vector.broadcast %3 : vector<1x32xf32> to vector<8x32xf32>
    %8 = arith.mulf %2, %7 : vector<8x32xf32>
    %cst_4 = arith.constant dense<0.000000e+00> : vector<8xf32>
    %9 = vector.multi_reduction <add>, %8, %cst_4 [1] : vector<8x32xf32> to vector<8xf32>
    %10 = vector.shape_cast %9 : vector<8xf32> to vector<8x1xf32>
    %cst_5 = arith.constant 2.000000e+00 : f32
    %11 = arith.mulf %cst_5, %0 : f32
    %12 = vector.broadcast %11 : f32 to vector<8x1xf32>
    %13 = arith.mulf %12, %10 : vector<8x1xf32>
    %14 = vector.broadcast %0 : f32 to vector<8x1xf32>
    %15 = arith.mulf %14, %6 : vector<8x1xf32>
    %cst_6 = arith.constant 1.000000e+00 : f32
    %16 = vector.broadcast %cst_6 : f32 to vector<8x1xf32>
    %17 = arith.addf %16, %13 : vector<8x1xf32>
    %18 = vector.broadcast %1 : f32 to vector<8x1xf32>
    %19 = arith.addf %17, %18 : vector<8x1xf32>
    %20 = vector.broadcast %19 : vector<8x1xf32> to vector<8x32xf32>
    %21 = arith.mulf %20, %2 : vector<8x32xf32>
    %cst_7 = arith.constant 1.000000e+00 : f32
    %22 = vector.broadcast %cst_7 : f32 to vector<8x1xf32>
    %23 = arith.subf %22, %15 : vector<8x1xf32>
    %24 = vector.broadcast %23 : vector<8x1xf32> to vector<8x32xf32>
    %25 = vector.broadcast %3 : vector<1x32xf32> to vector<8x32xf32>
    %26 = arith.mulf %24, %25 : vector<8x32xf32>
    %27 = arith.addf %21, %26 : vector<8x32xf32>
    %cst_8 = arith.constant 1.000000e+00 : f32
    %28 = vector.broadcast %cst_8 : f32 to vector<8x1xf32>
    %29 = arith.addf %28, %13 : vector<8x1xf32>
    %30 = vector.broadcast %1 : f32 to vector<8x1xf32>
    %31 = arith.mulf %15, %30 : vector<8x1xf32>
    %32 = arith.addf %29, %31 : vector<8x1xf32>
    %cst_9 = arith.constant 1.000000e-15 : f32
    %33 = vector.broadcast %cst_9 : f32 to vector<8x1xf32>
    %34 = arith.maximumf %32, %33 : vector<8x1xf32>
    %cst_10 = arith.constant 1.000000e+00 : f32
    %35 = vector.broadcast %cst_10 : f32 to vector<8x1xf32>
    %36 = arith.divf %35, %34 : vector<8x1xf32>
    %37 = vector.broadcast %36 : vector<8x1xf32> to vector<8x32xf32>
    %38 = arith.mulf %27, %37 : vector<8x32xf32>
    %c0_11 = arith.constant 0 : index
    %c0_12 = arith.constant 0 : index
    %39 = vector.load %arg4[%c0_11, %c0_12] : memref<8x32xf32, #tpu.memory_space<vmem>>, vector<8x32xf32>
    tpu.vector_store %arg4[%c0_11, %c0_12], %38 {strides = array<i32>} : memref<8x32xf32, #tpu.memory_space<vmem>>, vector<8x32xf32>,
    return
  }
  func.func @transform_0(%arg0: i32) -> i32 {
    %c0_i32 = arith.constant 0 : i32
    %c0_i32_0 = arith.constant 0 : i32
    return %c0_i32 : i32
  }
  func.func @transform_1(%arg0: i32) -> (i32, i32) {
    %c0_i32 = arith.constant 0 : i32
    %c0_i32_0 = arith.constant 0 : i32
    return %arg0, %c0_i32 : i32, i32
  }
  func.func @transform_2(%arg0: i32) -> (i32, i32) {
    %c0_i32 = arith.constant 0 : i32
    %c0_i32_0 = arith.constant 0 : i32
    %c0_i32_1 = arith.constant 0 : i32
    return %c0_i32, %c0_i32_0 : i32, i32
  }
  func.func @transform_3(%arg0: i32) -> (i32, i32) {
    %c0_i32 = arith.constant 0 : i32
    %c0_i32_0 = arith.constant 0 : i32
    return %arg0, %c0_i32 : i32, i32
  }
}

</mosaic_0001>

<bundles_post_ra>
// kernel: tpu_custom_call.1
= control target key start
LH: loop header
LB: loop body
LE: loop exit
PB: predicated region body
PF: predicated region fallthrough
CT: control target
= control target key end

     0   :  { %8 = vsyncpa [#allocation5], 0  ;;  %s224_s0 = inlined_call_operand.hbm [shape: f32[2], index: 0, kind: input, shape index: {}]   ;;  %s225_s1 = inlined_call_operand.hbm [shape: f32[8,32], index: 1, kind: input, shape index: {}]   ;;  %s226_s2 = inlined_call_operand.vmem [shape: f32[1,32], index: 2, kind: input, shape index: {}]   ;;  %s227_s3 = inlined_call_operand.hbm [shape: f32[8,32], index: 3, kind: output, shape index: {}]  }
   0x1   :  { %9 = vsyncpa [#allocation3], 0 }
   0x2   :  { %10 = vsyncpa [#allocation4], 0  ;;  %s99_s14 = scalar_lea.hbm %s224_s0, 16 }
   0x3   :  { %p100_p0 = scmp.ne.s32.totalorder %s224_s0, %s99_s14  ;;  %p103_p1 = scmp.lt.u32.totalorder %s99_s14, %s224_s0 }
   0x5   :  { %p105_p2 = pnand %p103_p1, %p100_p0 }
   0x7   :  { %108 = shalt.err (!%p105_p2)
}
   0x8   :  { %s159_s19 = smov [#allocation2]   ;;  %s160_s22 = smov [#allocation6]  }
   0x9   :  { %18 = dma.hbm_to_smem %s224_s0, 16, %s159_s19, [#allocation5]  }
   0xa   :  { %s25_s23 = sshll.u32 %s160_s22, 4  ;;  %s109_s26 = scalar_lea.hbm %s225_s1, 128  ;;  %s26_s23 = int_to_ptr.vmem [resolvable:$true] %s25_s23 }
   0xb   :  { %p110_p3 = scmp.ne.s32.totalorder %s225_s1, %s109_s26  ;;  %p113_p4 = scmp.lt.u32.totalorder %s109_s26, %s225_s1 }
   0xd   :  { %p115_p5 = pnand %p113_p4, %p110_p3 }
   0xf   :  { %118 = shalt.err (!%p115_p5)
}
  0x10   :  { %s119_s4 = scalar_lea.vmem %s26_s23, 128  ;;  %p124_p7 = scmp.lt.s32.totalorder %s26_s23, %s26_s23 }
  0x11   :  { %p120_p6 = scmp.ne.s32.totalorder %s26_s23, %s119_s4  ;;  %p125_p8 = scmp.lt.s32.totalorder %s119_s4, %s119_s4 }
  0x13   :  { %p126_p9 = por %p125_p8, %p124_p7 }
  0x15   :  { %p127_p10 = pnand %p126_p9, %p120_p6 }
  0x17   :  { %130 = shalt.err (!%p127_p10)
}
  0x18   :  { %28 = dma.hbm_to_vmem [thread:$0]  %s225_s1, 128, %s26_s23, [#allocation3]  }
  0x19   :  { %153 = dma.done.wait [#allocation5], 16  }
  0x1a   :  { %154 = vsyncadd [#allocation5], 4294967280 }
  0x1b   :  { %155 = dma.done.wait [#allocation3], 128  }
  0x1c   :  { %156 = vsyncadd [#allocation3], 4294967168 }
  0x1d   :  { %37 = sfence }
  0x1e   :  { %v40_v0 = vld [vmem:[#allocation6] sm:$0xff]  ;;  %vm43_vm0 = vcmask 261120   ;;  %s38_s1 = sld [smem:[#allocation2]]  ;;  %s92_s8 = sld [smem:[#allocation2 + $0x1]] }
  0x1f   :  { %v93_v1 = vld [vmem:[%s226_s2] ss:$0 sm:$0xff]  ;;  %v42_v2 = vmul.f32 %v40_v0, %v40_v0  ;;  %s161_s2 = smov [#allocation7]  }
  0x20   :  { %v53_v3 = vmul.f32 %v93_v1, %v40_v0  ;;  %s82_s10 = sshll.u32 %s161_s2, 4  ;;  %s83_s10 = int_to_ptr.vmem [resolvable:$true] %s82_s10 }
  0x21   :  { %v44_v4 = vsel %vm43_vm0, %v42_v2, 0.0  ;;  %s131_s11 = scalar_lea.vmem %s83_s10, 128  ;;  %p136_p12 = scmp.lt.s32.totalorder %s83_s10, %s83_s10 }
  0x22   :  { %45 = vadd.xlane.f32.xlu0 %v44_v4  ;;  %v54_v5 = vsel %vm43_vm0, %v53_v3, 0.0  ;;  %p132_p11 = scmp.ne.s32.totalorder %s83_s10, %s131_s11  ;;  %p137_p13 = scmp.lt.s32.totalorder %s131_s11, %s131_s11 }
  0x24   :  { %s57_s9 = smul.f32 2.0, %s38_s1  ;;  %v60_v7 = vstv %s38_s1  ;;  %v63_v10 = vstv %s92_s8  ;;  %p138_p0 = por %p137_p13, %p136_p12 }
  0x26   :  { %55 = vadd.xlane.f32.xlu0 %v54_v5  ;;  %v58_v8 = vstv %s57_s9  ;;  %p139_p1 = pnand %p138_p0, %p132_p11 }
  0xaf   :  { %v46_v6 = vpop.xlane.xlu0 %45 }
  0xb0   :  { %v61_v9 = vmul.f32 %v60_v7, %v46_v6 }
  0xb2   :  { %v69_v13 = vmul.f32 %v63_v10, %v61_v9  ;;  %v66_v18 = vsub.f32 1.0, %v61_v9 }
  0xb3   :  { %v56_v11 = vpop.xlane.xlu0 %55 }
  0xb4   :  { %v59_v12 = vmul.f32 %v58_v8, %v56_v11  ;;  %v67_v20 = vmul.f32 %v93_v1, %v66_v18 }
  0xb6   :  { %v62_v14 = vadd.f32 1.0, %v59_v12 }
  0xb8   :  { %v70_v15 = vadd.f32 %v69_v13, %v62_v14  ;;  %v64_v17 = vadd.f32 %v63_v10, %v62_v14 }
  0xba   :  { %v71_v16 = vmax.f32 %v70_v15, 1e-15  ;;  %v65_v19 = vmul.f32 %v64_v17, %v40_v0 }
  0xbc   :  { %97 = vrcp.f32 %v71_v16  ;;  %v68_v21 = vadd.f32 %v67_v20, %v65_v19 }
  0xc6   :  { %v98_v22 = vpop.eup %97 }
  0xc7   :  { %v74_v23 = vmul.f32 %v98_v22, %v68_v21 }
  0xc9   :  { %75 = vst.msk [vmem:[#allocation7] sm:$0xff] %vm43_vm0, %v74_v23 }
  0xca   :  { %142 = shalt.err (!%p139_p1)
}
  0xcb   :  { %s143_s14 = scalar_lea.hbm %s227_s3, 128 }
  0xcc   :  { %p144_p2 = scmp.ne.s32.totalorder %s227_s3, %s143_s14  ;;  %p147_p3 = scmp.lt.u32.totalorder %s143_s14, %s227_s3 }
  0xce   :  { %p149_p4 = pnand %p147_p3, %p144_p2 }
  0xd0   :  { %152 = shalt.err (!%p149_p4)
}
  0xd1   :  { %85 = dma.vmem_to_hbm [thread:$0]  %s83_s10, 128, %s227_s3, [#allocation4]  }
  0xd2   :  { %157 = dma.done.wait [#allocation4], 128  }
  0xd3   :  { %158 = vsyncadd [#allocation4], 4294967168 }
  0xd4   :  { %89 = vsyncpa [#allocation3], 1 }
  0xd5   :  { %90 = vsyncpa [#allocation4], 1 }
  0xd6   :  { %91 = vsyncpa [#allocation5], 1 }

</bundles_post_ra>
